<compile_context>
chip_gen: v7x
topology: tpu7x:2x2x1
jax: 0.10.0
libtpu: 0.0.40
codegen_flags: <defaults>
</compile_context>

<pallas_src>
import functools

import jax
import jax.numpy as jnp
from jax.experimental import pallas as pl
from jax.experimental.pallas import tpu as pltpu

_NEG_BIG = -1e30  # effectively -inf for padded vocab columns, but finite (no NaNs)
_MIB = 1024 * 1024


def _round_up(n, m):
    return ((n + m - 1) // m) * m


def _vmem_budget_bytes():
    """Usable scoped-VMEM budget derived from the actual chip.

    Leaves headroom for Mosaic internal scratch / semaphores:
    min(85% of capacity, capacity - 16 MiB)  ->  ~48 MiB on v7x (64 MiB),
    ~108 MiB on v5e/v6e (128 MiB).
    """
    try:
        cap = int(pltpu.get_tpu_info().vmem_capacity_bytes)
    except Exception:
        cap = 64 * _MIB  # conservative fallback (v7x per-TC)
    return min(int(cap * 0.85), cap - 16 * _MIB)


def _logits_stats_kernel(x_ref, w_ref, b_ref, logits_ref, lse_ref, m_ref, l_ref):
    """Pass A.  Grid = (row_tiles, vocab_tiles).

    Each step: one bf16 MXU matmul -> f32 logits tile (+ f32 bias), store the
    raw logits, and fold the tile into the running row max / sum-exp held in
    VMEM scratch.  At the last vocab tile the per-row LSE is written.  The
    weight matrix is streamed from HBM exactly once per row tile.
    """
    j = pl.program_id(1)

    @pl.when(j == 0)
    def _init():
        m_ref[...] = jnp.full(m_ref.shape, -jnp.inf, m_ref.dtype)
        l_ref[...] = jnp.zeros(l_ref.shape, l_ref.dtype)

    bias = b_ref[pl.ds(j, 1), :]  # (1, tv) slice of the VMEM-resident bias
    logits = jnp.dot(x_ref[...], w_ref[...],
                     preferred_element_type=jnp.float32) + bias

    m_prev = m_ref[...]
    m_new = jnp.maximum(m_prev, jnp.max(logits, axis=-1, keepdims=True))
    l_ref[...] = (l_ref[...] * jnp.exp(m_prev - m_new)
                  + jnp.sum(jnp.exp(logits - m_new), axis=-1, keepdims=True))
    m_ref[...] = m_new
    logits_ref[...] = logits

    @pl.when(j == pl.num_programs(1) - 1)
    def _write_lse():
        lse_ref[...] = m_ref[...] + jnp.log(l_ref[...])


def _sub_lse_kernel(logits_ref, lse_ref, o_ref):
    """Pass B (epilogue).  out = logits - lse, cast to the output dtype."""
    o_ref[...] = (logits_ref[...] - lse_ref[...]).astype(o_ref.dtype)


@functools.partial(
    jax.jit,
    static_argnames=("tile_rows", "tile_vocab", "out_dtype", "matmul_dtype"))
def generator_forward(x, w_t, b, *, tile_rows=512, tile_vocab=2048,
                      out_dtype=None, matmul_dtype=jnp.bfloat16):
    """log_softmax(x @ w_t + b, axis=-1)  — the Transformer Generator head.

    x:   (..., d_model)
    w_t: (d_model, vocab)   (PyTorch Linear weight, transposed)
    b:   (vocab,)

    Note: matmul operands are cast to `matmul_dtype` (default bf16 — native MXU
    rate, half the weight HBM traffic); accumulation, bias add and all softmax
    statistics stay f32.  Pass matmul_dtype=jnp.float32 to opt out.  Pass
    out_dtype=jnp.bfloat16 to halve the final log-prob write traffic.
    """
    d_model = x.shape[-1]
    vocab = w_t.shape[-1]
    lead = x.shape[:-1]
    out_dtype = jnp.dtype(x.dtype) if out_dtype is None else jnp.dtype(out_dtype)
    lo_bytes = jnp.dtype(matmul_dtype).itemsize
    out_bytes = out_dtype.itemsize

    x2 = x.reshape(-1, d_model)
    n_rows = x2.shape[0]

    # --- tile selection ------------------------------------------------------
    # (8, 128) aligned, clamped to the padded problem size.  Large row tiles
    # (default 512) keep the weight-stream arithmetic intensity above the
    # v6e/v7x roofline crossover.
    tm = min(_round_up(tile_rows, 8), _round_up(n_rows, 8))
    tv = min(_round_up(tile_vocab, 128), _round_up(vocab, 128))

    budget = _vmem_budget_bytes()
    vocab_aligned = _round_up(vocab, 128)

    def _est_a(tm_, tv_):
        # Pass-A working set: double-buffered x / weight / logits tiles,
        # resident bias, lse tile and the lane-padded m/l scratch.
        return (2 * tm_ * d_model * lo_bytes       # x tile
                + 2 * d_model * tv_ * lo_bytes     # weight tile (untiled K)
                + 2 * vocab_aligned * 4            # resident f32 bias
                + 2 * tm_ * tv_ * 4                # f32 logits output tile
                + 4 * tm_ * 128 * 4)               # lse out + m/l scratch

    # Shrink the vocab tile (then the row tile) until pass A fits the per-chip
    # budget — keeps weight/output double-buffering alive at large d_model on
    # v7x's 64 MiB without penalizing v5e/v6e's 128 MiB.
    while _est_a(tm, tv) > budget and tv > 512:
        tv = max(512, _round_up(tv // 2, 128))
    while _est_a(tm, tv) > budget and tm > 256:
        tm = max(256, _round_up(tm // 2, 8))

    rows_p = _round_up(n_rows, tm)
    vocab_p = _round_up(vocab, tv)
    n_vt = vocab_p // tv

    # --- padding ---------------------------------------------------------------
    if rows_p != n_rows:
        x2 = jnp.pad(x2, ((0, rows_p - n_rows), (0, 0)))
    w_p, b_p = w_t, b
    if vocab_p != vocab:
        w_p = jnp.pad(w_t, ((0, 0), (0, vocab_p - vocab)))
        # Padded columns get a hugely negative *f32* bias so they vanish from
        # the LSE.  This must stay on the f32 path (never cast to matmul_dtype).
        b_p = jnp.pad(b, ((0, vocab_p - vocab),), constant_values=_NEG_BIG)

    x_lo = x2.astype(matmul_dtype)
    w_lo = w_p.astype(matmul_dtype)
    b2 = b_p.reshape(n_vt, tv).astype(jnp.float32)  # row j == bias for vocab tile j

    # --- pass A: logits + online LSE (weight streamed exactly once) -----------
    vmem_a = min(max(int(1.5 * _est_a(tm, tv)), 32 * _MIB), budget)
    logits_p, lse = pl.pallas_call(
        _logits_stats_kernel,
        out_shape=(jax.ShapeDtypeStruct((rows_p, vocab_p), jnp.float32),
                   jax.ShapeDtypeStruct((rows_p, 1), jnp.float32)),
        grid_spec=pltpu.PrefetchScalarGridSpec(
            num_scalar_prefetch=0,
            grid=(rows_p // tm, n_vt),
            in_specs=[
                pl.BlockSpec((tm, d_model), lambda i, j: (i, 0)),
                pl.BlockSpec((d_model, tv), lambda i, j: (0, j)),
                pl.BlockSpec((n_vt, tv), lambda i, j: (0, 0)),   # resident bias
            ],
            out_specs=[
                pl.BlockSpec((tm, tv), lambda i, j: (i, j)),     # raw f32 logits
                pl.BlockSpec((tm, 1), lambda i, j: (i, 0)),      # per-row LSE
            ],
            scratch_shapes=[
                pltpu.VMEM((tm, 1), jnp.float32),   # running row max
                pltpu.VMEM((tm, 1), jnp.float32),   # running sum-exp
            ],
        ),
        compiler_params=pltpu.CompilerParams(
            dimension_semantics=("parallel", "arbitrary"),
            vmem_limit_bytes=vmem_a,
        ),
    )(x_lo, w_lo, b2)

    # --- pass B: lightweight epilogue, out = logits - lse ----------------------
    est_b = 2 * tm * tv * (4 + out_bytes) + 2 * tm * 128 * 4
    vmem_b = min(max(int(1.5 * est_b), 32 * _MIB), budget)
    out = pl.pallas_call(
        _sub_lse_kernel,
        out_shape=jax.ShapeDtypeStruct((rows_p, vocab_p), out_dtype),
        grid_spec=pltpu.PrefetchScalarGridSpec(
            num_scalar_prefetch=0,
            grid=(rows_p // tm, n_vt),
            in_specs=[
                pl.BlockSpec((tm, tv), lambda i, j: (i, j)),
                pl.BlockSpec((tm, 1), lambda i, j: (i, 0)),
            ],
            out_specs=pl.BlockSpec((tm, tv), lambda i, j: (i, j)),
        ),
        compiler_params=pltpu.CompilerParams(
            dimension_semantics=("parallel", "parallel"),
            vmem_limit_bytes=vmem_b,
        ),
    )(logits_p, lse)

    return out[:n_rows, :vocab].reshape(*lead, vocab)


if __name__ == "__main__":
    # Small shapes consistent with the module: (batch, seq, d_model) -> vocab.
    # seq=7 and vocab=320 deliberately exercise row padding, vocab padding and
    # the multi-tile streaming-LSE path.
    batch, seq, d_model, vocab = 2, 7, 32, 320

    key = jax.random.PRNGKey(0)
    kx, kw, kb = jax.random.split(key, 3)

    # Deterministic parameter init mimicking nn.Linear defaults:
    # uniform(-1/sqrt(d_model), 1/sqrt(d_model)).
    bound = 1.0 / (d_model ** 0.5)
    # PyTorch weight is (vocab, d_model); store it transposed for the kernel.
    w = jax.random.uniform(kw, (vocab, d_model), jnp.float32, -bound, bound)
    b = jax.random.uniform(kb, (vocab,), jnp.float32, -bound, bound)
    w_t = w.T  # (d_model, vocab)

    x = jax.random.normal(kx, (batch, seq, d_model), jnp.float32)

    # Reference in plain JAX with the same bf16 rounding of the matmul operands
    # (the kernel accumulates in f32).
    x_lo = x.astype(jnp.bfloat16).astype(jnp.float32)
    w_lo = w_t.astype(jnp.bfloat16).astype(jnp.float32)
    ref = jax.nn.log_softmax(x_lo @ w_lo + b, axis=-1)

    # 1) Small vocab tile so multiple vocab tiles (and the online LSE across
    #    them) are exercised at demo scale.
    out = generator_forward(x, w_t, b, tile_vocab=128)
    jax.block_until_ready(out)
    assert out.shape == (batch, seq, vocab)
    assert out.dtype == x.dtype
    err = float(jnp.max(jnp.abs(out - ref)))
    assert jnp.allclose(out, ref, atol=1e-2, rtol=1e-2), err

    # 2) Default tiles (single vocab tile path at this demo scale).
    out2 = generator_forward(x, w_t, b)
    jax.block_until_ready(out2)
    err2 = float(jnp.max(jnp.abs(out2 - ref)))
    assert jnp.allclose(out2, ref, atol=1e-2, rtol=1e-2), err2

    print("KERNEL_OK")
</pallas_src>

<mosaic_0001>
module attributes {stable_mosaic.version = 11 : i64} {
  func.func @_logits_stats_kernel(%arg0: i32, %arg1: i32, %arg2: memref<16x32xbf16, #tpu.memory_space<vmem>>, %arg3: memref<32x128xbf16, #tpu.memory_space<vmem>>, %arg4: memref<3x128xf32, #tpu.memory_space<vmem>>, %arg5: memref<16x128xf32, #tpu.memory_space<vmem>>, %arg6: memref<16x1xf32, #tpu.memory_space<vmem>>, %arg7: memref<16x1xf32, #tpu.memory_space<vmem>>, %arg8: memref<16x1xf32, #tpu.memory_space<vmem>>) attributes {dimension_semantics = [#tpu.dimension_semantics<parallel>, #tpu.dimension_semantics<arbitrary>], iteration_bounds = array<i64: 1, 3>, scalar_prefetch = 0 : i64, scratch_operands = 2 : i64, tpu.core_type = #tpu.core_type<tc>, window_params = [{transform_indices = @transform_0, window_bounds = array<i64: 16, 32>}, {transform_indices = @transform_1, window_bounds = array<i64: 32, 128>}, {pipeline_mode = #tpu.pipeline_mode<synchronous>, transform_indices = @transform_2, window_bounds = array<i64: 3, 128>}, {transform_indices = @transform_3, window_bounds = array<i64: 16, 128>}, {transform_indices = @transform_4, window_bounds = array<i64: 16, 1>}]} {
    %c0_i32 = arith.constant 0 : i32
    %0 = arith.cmpi eq, %arg1, %c0_i32 : i32
    %1 = arith.extui %0 : i1 to i32
    %c0_i32_0 = arith.constant 0 : i32
    %2 = arith.cmpi ne, %1, %c0_i32_0 : i32
    scf.if %2 {
      %cst_18 = arith.constant 0xFF800000 : f32
      %30 = vector.broadcast %cst_18 : f32 to vector<16x1xf32>
      %c0_19 = arith.constant 0 : index
      %c0_20 = arith.constant 0 : index
      %31 = vector.load %arg7[%c0_19, %c0_20] : memref<16x1xf32, #tpu.memory_space<vmem>>, vector<16x1xf32>
      tpu.vector_store %arg7[%c0_19, %c0_20], %30 {strides = array<i32>} : memref<16x1xf32, #tpu.memory_space<vmem>>, vector<16x1xf32>,
      %cst_21 = arith.constant 0.000000e+00 : f32
      %32 = vector.broadcast %cst_21 : f32 to vector<16x1xf32>
      %c0_22 = arith.constant 0 : index
      %c0_23 = arith.constant 0 : index
      %33 = vector.load %arg8[%c0_22, %c0_23] : memref<16x1xf32, #tpu.memory_space<vmem>>, vector<16x1xf32>
      tpu.vector_store %arg8[%c0_22, %c0_23], %32 {strides = array<i32>} : memref<16x1xf32, #tpu.memory_space<vmem>>, vector<16x1xf32>,
    } else {
    }
    %3 = arith.index_cast %arg1 : i32 to index
    %c0 = arith.constant 0 : index
    %4 = vector.load %arg4[%3, %c0] : memref<3x128xf32, #tpu.memory_space<vmem>>, vector<1x128xf32>
    %c0_1 = arith.constant 0 : index
    %c0_2 = arith.constant 0 : index
    %5 = vector.load %arg2[%c0_1, %c0_2] : memref<16x32xbf16, #tpu.memory_space<vmem>>, vector<16x32xbf16>
    %c0_3 = arith.constant 0 : index
    %c0_4 = arith.constant 0 : index
    %6 = vector.load %arg3[%c0_3, %c0_4] : memref<32x128xbf16, #tpu.memory_space<vmem>>, vector<32x128xbf16>
    %cst = arith.constant dense<0.000000e+00> : vector<16x128xf32>
    %7 = tpu.matmul %5, %6, %cst {dimension_numbers = #tpu.dot_dimension_numbers<[1], [0], [0], [1], [0, 0, 1, 1], [], []>} : vector<16x32xbf16>, vector<32x128xbf16>, vector<16x128xf32> -> vector<16x128xf32>
    %8 = vector.broadcast %4 : vector<1x128xf32> to vector<16x128xf32>
    %9 = arith.addf %7, %8 : vector<16x128xf32>
    %c0_5 = arith.constant 0 : index
    %c0_6 = arith.constant 0 : index
    %10 = vector.load %arg7[%c0_5, %c0_6] : memref<16x1xf32, #tpu.memory_space<vmem>>, vector<16x1xf32>
    %cst_7 = arith.constant dense<0xFF800000> : vector<16xf32>
    %11 = vector.multi_reduction <maximumf>, %9, %cst_7 [1] : vector<16x128xf32> to vector<16xf32>
    %12 = vector.shape_cast %11 : vector<16xf32> to vector<16x1xf32>
    %13 = arith.maximumf %10, %12 : vector<16x1xf32>
    %c0_8 = arith.constant 0 : index
    %c0_9 = arith.constant 0 : index
    %14 = vector.load %arg8[%c0_8, %c0_9] : memref<16x1xf32, #tpu.memory_space<vmem>>, vector<16x1xf32>
    %15 = arith.subf %10, %13 : vector<16x1xf32>
    %16 = math.exp %15 : vector<16x1xf32>
    %17 = arith.mulf %14, %16 : vector<16x1xf32>
    %18 = vector.broadcast %13 : vector<16x1xf32> to vector<16x128xf32>
    %19 = arith.subf %9, %18 : vector<16x128xf32>
    %20 = math.exp %19 : vector<16x128xf32>
    %cst_10 = arith.constant dense<0.000000e+00> : vector<16xf32>
    %21 = vector.multi_reduction <add>, %20, %cst_10 [1] : vector<16x128xf32> to vector<16xf32>
    %22 = vector.shape_cast %21 : vector<16xf32> to vector<16x1xf32>
    %23 = arith.addf %17, %22 : vector<16x1xf32>
    %c0_11 = arith.constant 0 : index
    %c0_12 = arith.constant 0 : index
    %24 = vector.load %arg8[%c0_11, %c0_12] : memref<16x1xf32, #tpu.memory_space<vmem>>, vector<16x1xf32>
    tpu.vector_store %arg8[%c0_11, %c0_12], %23 {strides = array<i32>} : memref<16x1xf32, #tpu.memory_space<vmem>>, vector<16x1xf32>,
    %c0_13 = arith.constant 0 : index
    %c0_14 = arith.constant 0 : index
    %25 = vector.load %arg7[%c0_13, %c0_14] : memref<16x1xf32, #tpu.memory_space<vmem>>, vector<16x1xf32>
    tpu.vector_store %arg7[%c0_13, %c0_14], %13 {strides = array<i32>} : memref<16x1xf32, #tpu.memory_space<vmem>>, vector<16x1xf32>,
    %c0_15 = arith.constant 0 : index
    %c0_16 = arith.constant 0 : index
    %26 = vector.load %arg5[%c0_15, %c0_16] : memref<16x128xf32, #tpu.memory_space<vmem>>, vector<16x128xf32>
    tpu.vector_store %arg5[%c0_15, %c0_16], %9 {strides = array<i32>} : memref<16x128xf32, #tpu.memory_space<vmem>>, vector<16x128xf32>,
    %c2_i32 = arith.constant 2 : i32
    %27 = arith.cmpi eq, %arg1, %c2_i32 : i32
    %28 = arith.extui %27 : i1 to i32
    %c0_i32_17 = arith.constant 0 : i32
    %29 = arith.cmpi ne, %28, %c0_i32_17 : i32
    scf.if %29 {
      %c0_18 = arith.constant 0 : index
      %c0_19 = arith.constant 0 : index
      %30 = vector.load %arg7[%c0_18, %c0_19] : memref<16x1xf32, #tpu.memory_space<vmem>>, vector<16x1xf32>
      %c0_20 = arith.constant 0 : index
      %c0_21 = arith.constant 0 : index
      %31 = vector.load %arg8[%c0_20, %c0_21] : memref<16x1xf32, #tpu.memory_space<vmem>>, vector<16x1xf32>
      %32 = math.log %31 : vector<16x1xf32>
      %33 = arith.addf %30, %32 : vector<16x1xf32>
      %c0_22 = arith.constant 0 : index
      %c0_23 = arith.constant 0 : index
      %34 = vector.load %arg6[%c0_22, %c0_23] : memref<16x1xf32, #tpu.memory_space<vmem>>, vector<16x1xf32>
      tpu.vector_store %arg6[%c0_22, %c0_23], %33 {strides = array<i32>} : memref<16x1xf32, #tpu.memory_space<vmem>>, vector<16x1xf32>,
    } else {
    }
    return
  }
  func.func @transform_0(%arg0: i32, %arg1: i32) -> (i32, i32) {
    %c0_i32 = arith.constant 0 : i32
    %c0_i32_0 = arith.constant 0 : i32
    return %arg0, %c0_i32 : i32, i32
  }
  func.func @transform_1(%arg0: i32, %arg1: i32) -> (i32, i32) {
    %c0_i32 = arith.constant 0 : i32
    %c0_i32_0 = arith.constant 0 : i32
    return %c0_i32, %arg1 : i32, i32
  }
  func.func @transform_2(%arg0: i32, %arg1: i32) -> (i32, i32) {
    %c0_i32 = arith.constant 0 : i32
    %c0_i32_0 = arith.constant 0 : i32
    %c0_i32_1 = arith.constant 0 : i32
    return %c0_i32, %c0_i32_0 : i32, i32
  }
  func.func @transform_3(%arg0: i32, %arg1: i32) -> (i32, i32) {
    %c0_i32 = arith.constant 0 : i32
    return %arg0, %arg1 : i32, i32
  }
  func.func @transform_4(%arg0: i32, %arg1: i32) -> (i32, i32) {
    %c0_i32 = arith.constant 0 : i32
    %c0_i32_0 = arith.constant 0 : i32
    return %arg0, %c0_i32 : i32, i32
  }
}

module attributes {stable_mosaic.version = 11 : i64} {
  func.func @_sub_lse_kernel(%arg0: i32, %arg1: i32, %arg2: memref<16x128xf32, #tpu.memory_space<vmem>>, %arg3: memref<16x1xf32, #tpu.memory_space<vmem>>, %arg4: memref<16x128xf32, #tpu.memory_space<vmem>>) attributes {dimension_semantics = [#tpu.dimension_semantics<parallel>, #tpu.dimension_semantics<parallel>], iteration_bounds = array<i64: 1, 3>, scalar_prefetch = 0 : i64, scratch_operands = 0 : i64, tpu.core_type = #tpu.core_type<tc>, window_params = [{transform_indices = @transform_0, window_bounds = array<i64: 16, 128>}, {transform_indices = @transform_1, window_bounds = array<i64: 16, 1>}, {transform_indices = @transform_2, window_bounds = array<i64: 16, 128>}]} {
    %c0 = arith.constant 0 : index
    %c0_0 = arith.constant 0 : index
    %0 = vector.load %arg2[%c0, %c0_0] : memref<16x128xf32, #tpu.memory_space<vmem>>, vector<16x128xf32>
    %c0_1 = arith.constant 0 : index
    %c0_2 = arith.constant 0 : index
    %1 = vector.load %arg3[%c0_1, %c0_2] : memref<16x1xf32, #tpu.memory_space<vmem>>, vector<16x1xf32>
    %2 = vector.broadcast %1 : vector<16x1xf32> to vector<16x128xf32>
    %3 = arith.subf %0, %2 : vector<16x128xf32>
    %c0_3 = arith.constant 0 : index
    %c0_4 = arith.constant 0 : index
    %4 = vector.load %arg4[%c0_3, %c0_4] : memref<16x128xf32, #tpu.memory_space<vmem>>, vector<16x128xf32>
    tpu.vector_store %arg4[%c0_3, %c0_4], %3 {strides = array<i32>} : memref<16x128xf32, #tpu.memory_space<vmem>>, vector<16x128xf32>,
    return
  }
  func.func @transform_0(%arg0: i32, %arg1: i32) -> (i32, i32) {
    %c0_i32 = arith.constant 0 : i32
    return %arg0, %arg1 : i32, i32
  }
  func.func @transform_1(%arg0: i32, %arg1: i32) -> (i32, i32) {
    %c0_i32 = arith.constant 0 : i32
    %c0_i32_0 = arith.constant 0 : i32
    return %arg0, %c0_i32 : i32, i32
  }
  func.func @transform_2(%arg0: i32, %arg1: i32) -> (i32, i32) {
    %c0_i32 = arith.constant 0 : i32
    return %arg0, %arg1 : i32, i32
  }
}

</mosaic_0001>

<bundles_post_ra>
// kernel: generator_forward.3
= control target key start
LH: loop header
LB: loop body
LE: loop exit
PB: predicated region body
PF: predicated region fallthrough
CT: control target
= control target key end

     0   :  { %s481_s9 = smov 0   ;;  %s483_s10 = smov 0   ;;  %s559_s0 = inlined_call_operand.vmem [shape: f32[16,384], index: 0, kind: input, shape index: {}]   ;;  %s560_s1 = inlined_call_operand.vmem [shape: f32[16,1], index: 1, kind: input, shape index: {}]   ;;  %s561_s2 = inlined_call_operand.vmem [shape: f32[16,384], index: 2, kind: output, shape index: {}]  }
   0x1   :  { %s485_s11 = smov 0   ;;  %s487_s12 = smov 0  }
   0x2   :  { %s489_s13 = smov 0  }
   0x3 LB: > { %s21_s14 = sadd.s32 1, %s459_s12  ;;  %s369_s15 = sadd.s32 4294967295, %s463_s13   ;;  %s463_s13 = sphi %s489_s13, %s12_s13   ;;  %s459_s12 = sphi %s487_s12, %s566_s12   ;;  %s455_s11 = sphi %s485_s11, %s565_s11   ;;  %s451_s10 = sphi %s483_s10, %s564_s10   ;;  %s447_s9 = sphi %s481_s9, %s563_s9  }
   0x4   : > { %p22_p0 = scmp.ge.s32.totalorder %s21_s14, 3  ;;  %p40_p1 = scmp.ne.s32.totalorder %s451_s10, %s447_s9 }
   0x5   : > { %p41_p2 = scmp.eq.s32.totalorder %s463_s13, 0  ;;  %p98_p4 = scmp.eq.s32.totalorder %s369_s15, 2 }
   0x6   : > { %s568_s14 = smov (%p22_p0, %s21_s14), 0  ;;  %s33_s17 = sadd.s32 1, %s451_s10 }
   0x7   : > { %p42_p3 = por %p41_p2, %p40_p1  ;;  %s29_s16 = ssub.s32 %s459_s12, %s568_s14 }
   0x8   : > { %p31_p5 = scmp.eq.s32.totalorder %s29_s16, 0  ;;  %p516_p6 = por %p98_p4, %p40_p1 }
   0x9   : > { %p373_p7 = scmp.ge.s32.totalorder %s463_s13, 3 }
   0xa   : > { %s521_s19 = scalar_select %p31_p5, %s451_s10, %s33_s17  }
   0xb   : > { %129 = sbr.rel (%p373_p7) target bundleno = 25 (0x19), region = 20 }
  0x12   : > { %132 = sbr.rel (!%p42_p3) target bundleno = 25 (0x19), region = 24  ;;  %s134_s20 = sand.u32 (%p42_p3), 1, %s451_s10  }
  0x13   : > { %s375_s21 = sshll.u32 (%p42_p3), %s459_s12, 3  ;;  %s374_s22 = sshll.u32 (%p42_p3), %s134_s20, 4 }
  0x14   : > { %s141_s25 = scalar_lea.vmem (%p42_p3), %s559_s0, %s375_s21  ;;  %s136_s26 = scalar_lea.vmem (%p42_p3), [#allocation2], %s374_s22 }
  0x15   : > { %v171_v0 = vld [vmem:[%s141_s25] sm:$0xff] (%p42_p3)  ;;  %v173_v1 = vld [vmem:[%s141_s25 + $0x18] sm:$0xff] (%p42_p3) }
  0x16   : > { %172 = vst [vmem:[%s136_s26] sm:$0xff] (%p42_p3), %v171_v0  ;;  %174 = vst [vmem:[%s136_s26 + $0x8] sm:$0xff] (%p42_p3), %v173_v1 }
  0x19 PF: > { %p376_p8 = scmp.ge.s32.totalorder %s463_s13, 1  ;;  %p179_p9 = scmp.lt.s32.totalorder %s463_s13, 4 }
  0x1b   : > { %p180_p10 = pnand %p376_p8, %p179_p9 }
  0x1c   : > { %v221_v2 = vld [vmem:[%s560_s1] sm:$0xff] (!%p180_p10)  ;;  %v465_v3 = vmov (!%p180_p10), 0   ;;  %v222_v4 = vld [vmem:[%s560_s1 + $0x8] sm:$0xff] (!%p180_p10)  ;;  %s186_s3 = sand.u32 (!%p180_p10), 1, %s447_s9  }
  0x1d   : > { %183 = sbr.rel (%p180_p10) target bundleno = 173 (0xad), region = 62  ;;  %424 = vset.pattern.permute.xlu0 (!%p180_p10), %v465_v3  ;;  %s377_s4 = sshll.u32 (!%p180_p10), %s186_s3, 4 }
  0x1e   : > { %225 = vperm.xlu0 (!%p180_p10), %424, %v221_v2   ;;  %s188_s5 = scalar_lea.vmem (!%p180_p10), [#allocation2], %s377_s4  ;;  %s210_s6 = scalar_lea.vmem (!%p180_p10), [#allocation3], %s377_s4 }
  0x1f   : > { %v219_v5 = vld [vmem:[%s188_s5] sm:$0xff] (!%p180_p10)  ;;  %v220_v8 = vld [vmem:[%s188_s5 + $0x8] sm:$0xff] (!%p180_p10) }
  0x22   : > { %230 = vperm.xlu0 (!%p180_p10), %424, %v222_v4  }
  0x24   : > { %s380_s7 = sshll.u32 (%p516_p6), %s455_s11, 3 }
  0x25   : > { %s248_s15 = scalar_lea.vmem (%p516_p6), %s561_s2, %s380_s7 }
  0x9d   : > { %v226_v6 = vpop.permute.xlu0 %225 }
  0x9e   : > { %v233_v7 = vsub.f32 %v219_v5, %v226_v6  ;;  %243 = sbr.rel (!%p516_p6) target bundleno = 173 (0xad), region = 70 }
  0xa0   : > { %235 = vst [vmem:[%s210_s6] sm:$0xff] %v233_v7 }
  0xa1   : > { %v231_v9 = vpop.permute.xlu0 %230 }
  0xa2   : > { %v234_v10 = vsub.f32 %v220_v8, %v231_v9 }
  0xa4   : > { %236 = vst [vmem:[%s210_s6 + $0x8] sm:$0xff] %v234_v10 }
  0xa7   : > { %v278_v11 = vld [vmem:[%s210_s6] sm:$0xff] }
  0xa8   : > { %279 = vst [vmem:[%s248_s15] sm:$0xff] %v278_v11 }
  0xab   : > { %v280_v12 = vld [vmem:[%s210_s6 + $0x8] sm:$0xff] }
  0xac   : > { %281 = vst [vmem:[%s248_s15 + $0x18] sm:$0xff] %v280_v12 }
  0xad PF: > { %s12_s13 = sadd.s32 1, %s463_s13   ;;  %s563_s9 = smov %s451_s10 }
  0xae   : > { %p9_p11 = scmp.ge.s32.totalorder %s12_s13, 5   ;;  %s564_s10 = smov %s521_s19 }
  0xaf   : > { %s565_s11 = smov %s459_s12  ;;  %s566_s12 = smov %s568_s14 }
  0xb0   :  { %11 = sbr.rel (!%p9_p11) target bundleno = 3 (0x3), region = 142 }

// kernel: generator_forward.2
= control target key start
LH: loop header
LB: loop body
LE: loop exit
PB: predicated region body
PF: predicated region fallthrough
CT: control target
= control target key end

     0   :  { %s771_s15 = smov 0   ;;  %s773_s16 = smov 0   ;;  %s870_s0 = inlined_call_operand.vmem [shape: bf16[16,32], index: 0, kind: input, shape index: {}]   ;;  %s871_s1 = inlined_call_operand.vmem [shape: bf16[32,384], index: 1, kind: input, shape index: {}]   ;;  %s872_s2 = inlined_call_operand.vmem [shape: f32[3,128], index: 2, kind: input, shape index: {}]   ;;  %s873_s3 = inlined_call_operand.vmem [shape: f32[16,384], index: 3, kind: output, shape index: {0}]   ;;  %s874_s4 = inlined_call_operand.vmem [shape: f32[16,1], index: 4, kind: output, shape index: {1}]  }
   0x1   :  { %s775_s17 = smov 0   ;;  %s777_s18 = smov 0  }
   0x2   :  { %s779_s19 = smov 0  }
   0x3 LB: > { %s24_s20 = sadd.s32 1, %s735_s18  ;;  %s605_s21 = sadd.s32 4294967295, %s739_s19   ;;  %s739_s19 = sphi %s779_s19, %s15_s19   ;;  %s735_s18 = sphi %s777_s18, %s879_s18   ;;  %s731_s17 = sphi %s775_s17, %s878_s17   ;;  %s727_s16 = sphi %s773_s16, %s877_s16   ;;  %s723_s15 = sphi %s771_s15, %s876_s15  }
   0x4   : > { %p25_p0 = scmp.ge.s32.totalorder %s24_s20, 3  ;;  %p67_p1 = scmp.ne.s32.totalorder %s727_s16, %s723_s15 }
   0x5   : > { %p68_p2 = scmp.eq.s32.totalorder %s739_s19, 0  ;;  %p120_p4 = scmp.eq.s32.totalorder %s605_s21, 2 }
   0x6   : > { %s881_s20 = smov (%p25_p0, %s24_s20), 0  ;;  %s60_s23 = sadd.s32 1, %s727_s16 }
   0x7   : > { %p69_p3 = por %p68_p2, %p67_p1  ;;  %s57_s22 = ssub.s32 %s735_s18, %s881_s20 }
   0x8   : > { %p58_p5 = scmp.eq.s32.totalorder %s57_s22, 0  ;;  %p806_p6 = por %p120_p4, %p67_p1 }
   0x9   : > { %p609_p7 = scmp.ge.s32.totalorder %s739_s19, 3 }
   0xa   : > { %s811_s25 = scalar_select %p58_p5, %s727_s16, %s60_s23  }
   0xb   : > { %180 = sbr.rel (%p609_p7) target bundleno = 25 (0x19), region = 24 }
  0x12   : > { %183 = sbr.rel (!%p69_p3) target bundleno = 25 (0x19), region = 28  ;;  %s185_s26 = sand.u32 (%p69_p3), 1, %s727_s16  }
  0x13   : > { %s611_s27 = sshll.u32 (%p69_p3), %s735_s18, 2  ;;  %s610_s28 = sshll.u32 (%p69_p3), %s185_s26, 4 }
  0x14   : > { %s189_s5 = scalar_lea.vmem (%p69_p3), %s871_s1, %s611_s27  ;;  %s187_s6 = scalar_lea.vmem (%p69_p3), [#allocation4], %s610_s28 }
  0x15   : > { %v205_v0 = vld [vmem:[%s189_s5] sm:$0xf] (%p69_p3)  ;;  %v207_v1 = vld [vmem:[%s189_s5 + $0xc] sm:$0xf] (%p69_p3)  ;;  %v209_v2 = vld [vmem:[%s189_s5 + $0x18] sm:$0xf] (%p69_p3) }
  0x16   : > { %206 = vst [vmem:[%s187_s6] sm:$0xf] (%p69_p3), %v205_v0  ;;  %208 = vst [vmem:[%s187_s6 + $0x4] sm:$0xf] (%p69_p3), %v207_v1  ;;  %v211_v3 = vld [vmem:[%s189_s5 + $0x24] sm:$0xf] (%p69_p3) }
  0x17   : > { %210 = vst [vmem:[%s187_s6 + $0x8] sm:$0xf] (%p69_p3), %v209_v2  ;;  %212 = vst [vmem:[%s187_s6 + $0xc] sm:$0xf] (%p69_p3), %v211_v3 }
  0x19 PF: > { %p612_p8 = scmp.ge.s32.totalorder %s739_s19, 1  ;;  %p242_p9 = scmp.lt.s32.totalorder %s739_s19, 4 }
  0x1b   : > { %p243_p10 = pnand %p612_p8, %p242_p9 }
  0x1c   : > { %s249_s7 = sand.u32 (!%p243_p10), 1, %s723_s15   ;;  %p615_p11 = scmp.ne.s32.totalorder (!%p243_p10), %s731_s17, 0 }
  0x1d   : > { %246 = sbr.rel (%p243_p10) target bundleno = 732 (0x2dc), region = 69  ;;  %s613_s8 = sshll.u32 (!%p243_p10), %s249_s7, 4 }
  0x1e   : > { %s251_s9 = scalar_lea.vmem (!%p243_p10), [#allocation4], %s613_s8  ;;  %s822_s10 = scalar_lea.vmem (!%p243_p10), [#allocation5], %s613_s8 }
  0x24   : > { %300 = sbr.rel (%p615_p11) target bundleno = 43 (0x2b), region = 77  ;;  %vm301_vm0 = vcmask (!%p615_p11), 7168   ;;  %v741_v4 = vmov (!%p615_p11), -inf   ;;  %v742_v5 = vmov (!%p615_p11), 0.0  }
  0x25   : > { %302 = vst.msk [vmem:[#allocation2] sm:$0xff] (!%p615_p11), %vm301_vm0, %v741_v4  ;;  %303 = vst.msk [vmem:[#allocation2 + $0x8] sm:$0xff] (!%p615_p11), %vm301_vm0, %v741_v4 }
  0x26   : > { %304 = vst.msk [vmem:[#allocation3] sm:$0xff] (!%p615_p11), %vm301_vm0, %v742_v5  ;;  %305 = vst.msk [vmem:[#allocation3 + $0x8] sm:$0xff] (!%p615_p11), %vm301_vm0, %v742_v5 }
  0x2b PF: > { %v686_v6 = vld [vmem:[%s251_s9] sm:$0xff]   ;;  %v743_v7 = vmov 0.0   ;;  %v687_v8 = vld [vmem:[%s251_s9 + $0x8] sm:$0xff]   ;;  %vm744_vm1 = vmmov 0   ;;  %vm335_vm2 = vcmask 261120   ;;  %s306_s15 = scalar_lea.vmem %s872_s2, %s731_s17  ;;  %v745_v17 = vmov 0  }
  0x2c   : > { %631 = vmatprep.subr.bf16.mxu0 %v743_v7  ;;  %635 = vmatprep.mubr.msk.bf16.mxu0 %vm744_vm1, %v743_v7  ;;  %v688_v9 = vld [vmem:[%s870_s0] sm:$0xff]   ;;  %vm420_vm3 = vcmask 7168   ;;  %v381_v21 = vld [vmem:[#allocation2 + $0x8] sm:$0xff]  ;;  %p621_p12 = scmp.ne.s32.totalorder %s731_s17, 2 }
  0x2d   : > { %632 = vmatpush3.bf16.msra.mxu0 %v686_v6  ;;  %v616_v10 = vld [vmem:[%s306_s15] ss:$0 sm:$0xff]  ;;  %684 = vset.pattern.permute.xlu1 %v745_v17  ;;  %v388_v37 = vld [vmem:[#allocation3] sm:$0xff]  ;;  %v389_v41 = vld [vmem:[#allocation3 + $0x8] sm:$0xff] }
  0x2e   : > { %633 = vmatprep.subr.bf16.mxu0 %v743_v7  ;;  %685 = vset.pattern.permute.xlu0 %v745_v17  ;;  %v380_v18 = vld [vmem:[#allocation2] sm:$0xff] }
  0x31   : > { %634 = vmatpush3.bf16.msra.mxu0 %v687_v8 }
  0x34   : > { %636 = vmatmul.mubr.msk.bf16.vlgmr.msra.gmra.mrb[0].mxu0 %vm335_vm2, %v688_v9 }
 0x107   : > { %v373_v11 = vpop.f32.mrb[0].mxu0 }
 0x108   : > { %v374_v12 = vadd.f32 %v616_v10, %v373_v11  ;;  %v637_v13 = vpop.f32.mrb[1].mxu0 }
 0x109   : > { %v376_v14 = vpop.f32.mrb[2].mxu0 }
 0x10a   : > { %425 = vst [vmem:[%s822_s10] sm:$0xff] %v374_v12  ;;  %v377_v15 = vadd.f32 %v616_v10, %v376_v14  ;;  %v638_v16 = vpop.f32.mrb[3].mxu0  ;;  %382 = vmax.xlane.f32.xlu0 %v374_v12 }
 0x10c   : > { %426 = vst [vmem:[%s822_s10 + $0x8] sm:$0xff] %v377_v15 }
 0x10e   : > { %384 = vmax.xlane.f32.xlu0 %v377_v15 }
 0x197   : > { %v383_v19 = vpop.xlane.xlu0 %382 }
 0x198   : > { %v386_v20 = vmax.f32 %v380_v18, %v383_v19 }
 0x19a   : > { %v390_v22 = vsub.f32 %v380_v18, %v386_v20  ;;  %423 = vst.msk [vmem:[#allocation2] sm:$0xff] %vm420_vm3, %v386_v20  ;;  %400 = vperm.xlu1 %684, %v386_v20  }
 0x19b   : > { %v385_v23 = vpop.xlane.xlu0 %384 }
 0x19c   : > { %v387_v24 = vmax.f32 %v381_v21, %v385_v23  ;;  %v392_v34 = vmul.f32 1.442695, %v390_v22 }
 0x19e   : > { %v391_v25 = vsub.f32 %v381_v21, %v387_v24  ;;  %424 = vst.msk [vmem:[#allocation2 + $0x8] sm:$0xff] %vm420_vm3, %v387_v24  ;;  %405 = vperm.xlu1 %684, %v387_v24  }
 0x1a0   : > { %v394_v35 = vmul.f32 1.442695, %v391_v25 }
 0x1a1   : > { %v431_v49 = vld [vmem:[#allocation2] sm:$0xff] (!%p621_p12) }
 0x1a5   : > { %v432_v52 = vld [vmem:[#allocation2 + $0x8] sm:$0xff] (!%p621_p12) }
 0x219   : > { %v401_v26 = vpop.permute.xlu1 %400 }
 0x21a   : > { %v408_v27 = vsub.f32 %v374_v12, %v401_v26 }
 0x21c   : > { %v410_v28 = vmul.f32 1.442695, %v408_v27 }
 0x21d   : > { %v406_v29 = vpop.permute.xlu1 %405 }
 0x21e   : > { %689 = vpow2.f32 %v410_v28  ;;  %v409_v30 = vsub.f32 %v377_v15, %v406_v29 }
 0x220   : > { %v412_v31 = vmul.f32 1.442695, %v409_v30 }
 0x222   : > { %691 = vpow2.f32 %v412_v31 }
 0x223   : > { %693 = vpow2.f32 %v392_v34 }
 0x224   : > { %695 = vpow2.f32 %v394_v35 }
 0x228   : > { %v690_v32 = vpop.eup %689 }
 0x229   : > { %414 = vadd.xlane.f32.xlu0 %v690_v32 }
 0x22c   : > { %v692_v33 = vpop.eup %691 }
 0x22d   : > { %416 = vadd.xlane.f32.xlu1 %v692_v33  ;;  %v694_v36 = vpop.eup %693 }
 0x22e   : > { %v396_v38 = vmul.f32 %v694_v36, %v388_v37  ;;  %v696_v39 = vpop.eup %695 }
 0x22f   : > { %v397_v43 = vmul.f32 %v696_v39, %v389_v41 }
 0x2b6   : > { %v415_v40 = vpop.xlane.xlu0 %414 }
 0x2b7   : > { %v418_v42 = vadd.f32 %v415_v40, %v396_v38  ;;  %430 = sbr.rel (%p621_p12) target bundleno = 725 (0x2d5), region = 81 }
 0x2b9   : > { %421 = vst.msk [vmem:[#allocation3] sm:$0xff] %vm420_vm3, %v418_v42 }
 0x2ba   : > { %v417_v44 = vpop.xlane.xlu1 %416 }
 0x2bb   : > { %v419_v45 = vadd.f32 %v417_v44, %v397_v43 }
 0x2bd   : > { %422 = vst.msk [vmem:[#allocation3 + $0x8] sm:$0xff] %vm420_vm3, %v419_v45 }
 0x2c0   : > { %v433_v46 = vld [vmem:[#allocation3] sm:$0xff] }
 0x2c1   : > { %697 = vlog2.f32 %v433_v46 }
 0x2c4   : > { %v434_v47 = vld [vmem:[#allocation3 + $0x8] sm:$0xff] }
 0x2c5   : > { %699 = vlog2.f32 %v434_v47 }
 0x2cb   : > { %v698_v48 = vpop.eup %697 }
 0x2cc   : > { %v436_v51 = vmul.f32 0.6931472, %v698_v48 }
 0x2ce   : > { %v439_v54 = vadd.f32 %v436_v51, %v431_v49 }
 0x2cf   : > { %v700_v50 = vpop.eup %699 }
 0x2d0   : > { %v438_v53 = vmul.f32 0.6931472, %v700_v50  ;;  %441 = vst.msk [vmem:[%s874_s4] sm:$0xff] %vm420_vm3, %v439_v54 }
 0x2d2   : > { %v440_v55 = vadd.f32 %v438_v53, %v432_v52 }
 0x2d4   : > { %442 = vst.msk [vmem:[%s874_s4 + $0x8] sm:$0xff] %vm420_vm3, %v440_v55 }
 0x2d5 PF: > { %454 = sbr.rel (!%p806_p6) target bundleno = 732 (0x2dc), region = 85  ;;  %s623_s27 = sshll.u32 (%p806_p6), %s731_s17, 3  ;;  %v489_v56 = vld [vmem:[%s822_s10] sm:$0xff] (%p806_p6)  ;;  %v491_v57 = vld [vmem:[%s822_s10 + $0x8] sm:$0xff] (%p806_p6) }
 0x2d6   : > { %s459_s30 = scalar_lea.vmem (%p806_p6), %s873_s3, %s623_s27 }
 0x2d7   : > { %490 = vst [vmem:[%s459_s30] sm:$0xff] (%p806_p6), %v489_v56  ;;  %492 = vst [vmem:[%s459_s30 + $0x18] sm:$0xff] (%p806_p6), %v491_v57 }
 0x2dc PF: > { %s15_s19 = sadd.s32 1, %s739_s19   ;;  %s876_s15 = smov %s727_s16 }
 0x2dd   : > { %p12_p13 = scmp.ge.s32.totalorder %s15_s19, 5   ;;  %s877_s16 = smov %s811_s25 }
 0x2de   : > { %s878_s17 = smov %s735_s18  ;;  %s879_s18 = smov %s881_s20 }
 0x2df   :  { %14 = sbr.rel (!%p12_p13) target bundleno = 3 (0x3), region = 170 }

</bundles_post_ra>
